<compile_context>
chip_gen: v5e
topology: v5e:2x2
jax: 0.10.0
libtpu: 0.0.40
codegen_flags: <defaults>
</compile_context>

<pallas_src>
import functools

import jax
import jax.numpy as jnp
from jax import lax
from jax.experimental import pallas as pl
from jax.experimental.pallas import tpu as pltpu

# Small, module-consistent shapes.
S, B, D = 8, 2, 32          # seq len, batch, d_model
NHEAD = 4
DFF = 64                    # dim_feedforward (passed explicitly; default 2048)
HEAD_DIM = D // NHEAD
EPS = 1e-5
R = S * B                   # flattened row count (s-major, b-minor)

# Packed-weight layout per layer. Column width = 128 lanes (set by the
# lane-dense Wvo block); every per-layer row offset is a multiple of 8.
WCOL = NHEAD * D            # 128
ROW_WQ = 0                  # rows [0, D)        : Wq^T, softmax scale folded
ROW_WK = D                  # rows [D, 2D)       : Wk^T
ROW_WVO = 2 * D             # rows [2D, 3D)      : per-head Wv_h @ Wo_h (D, 4D)
ROW_W1 = 3 * D              # rows [3D, 4D)      : W1^T (D, DFF)
ROW_W2 = 4 * D              # rows [4D, 4D+DFF)  : W2^T (DFF, D)
WROWS = 4 * D + DFF         # 192 rows per layer

# Packed bias/scale rows per layer (row index, used lane width).
VROW_BQ, VROW_BK, VROW_BATTN, VROW_B1, VROW_B2 = 0, 1, 2, 3, 4
VROW_G1, VROW_BT1, VROW_G2, VROW_BT2 = 5, 6, 7, 8
VROWS = 16                  # padded to a sublane multiple per layer

# v5e/v6e/v7x knob: set to jnp.bfloat16 for native MXU operands (f32 accum
# kept via preferred_element_type); relax tolerance in __main__ if flipped.
MATMUL_DTYPE = jnp.float32


def _mm(a, b):
    """Plain (1,0)-contraction matmul, optional bf16 operands, f32 accum."""
    if MATMUL_DTYPE != jnp.float32:
        a = a.astype(MATMUL_DTYPE)
        b = b.astype(MATMUL_DTYPE)
    return lax.dot_general(a, b, (((1,), (0,)), ((), ())),
                           preferred_element_type=jnp.float32)


def _layernorm(x, gamma, beta):
    mu = jnp.mean(x, axis=-1, keepdims=True)
    var = jnp.mean((x - mu) ** 2, axis=-1, keepdims=True)
    return (x - mu) * lax.rsqrt(var + EPS) * gamma + beta


def encoder_stack_kernel(x_ref, w_ref, v_ref, o_ref, *, num_layers):
    x = x_ref[...]                                   # (R, D) activation slab

    # Additive same-batch attention bias: row r of the s-major/b-minor
    # flattening belongs to batch r % B.  One f32 (R, R) constant shared by
    # every head and every layer (vadd instead of per-head vselect).
    ri = lax.broadcasted_iota(jnp.int32, (R, R), 0)
    ci = lax.broadcasted_iota(jnp.int32, (R, R), 1)
    attn_bias = jnp.where((ri % B) == (ci % B), 0.0, -1e30).astype(jnp.float32)

    for l in range(num_layers):                      # static unroll over layers
        wb = l * WROWS
        vb = l * VROWS
        # Static, sublane-aligned slices of the packed VMEM refs.
        wq = w_ref[wb + ROW_WQ:wb + ROW_WQ + D, 0:D]
        wk = w_ref[wb + ROW_WK:wb + ROW_WK + D, 0:D]
        wvo = w_ref[wb + ROW_WVO:wb + ROW_WVO + D, 0:NHEAD * D]
        w1 = w_ref[wb + ROW_W1:wb + ROW_W1 + D, 0:DFF]
        w2 = w_ref[wb + ROW_W2:wb + ROW_W2 + DFF, 0:D]
        bq = v_ref[vb + VROW_BQ:vb + VROW_BQ + 1, 0:D]
        bk = v_ref[vb + VROW_BK:vb + VROW_BK + 1, 0:D]
        battn = v_ref[vb + VROW_BATTN:vb + VROW_BATTN + 1, 0:D]
        b1 = v_ref[vb + VROW_B1:vb + VROW_B1 + 1, 0:DFF]
        b2 = v_ref[vb + VROW_B2:vb + VROW_B2 + 1, 0:D]
        g1 = v_ref[vb + VROW_G1:vb + VROW_G1 + 1, 0:D]
        bt1 = v_ref[vb + VROW_BT1:vb + VROW_BT1 + 1, 0:D]
        g2 = v_ref[vb + VROW_G2:vb + VROW_G2 + 1, 0:D]
        bt2 = v_ref[vb + VROW_BT2:vb + VROW_BT2 + 1, 0:D]

        # --- MultiheadAttention(src, src, src), all rows (= all batches) ---
        q = _mm(x, wq) + bq                          # (R, D); scale pre-folded
        kt = jnp.transpose(_mm(x, wk) + bk)          # (D, R); ONE transpose/layer
        vo = _mm(x, wvo)                             # (R, 4D); Wv_h@Wo_h folded

        acc = jnp.zeros((R, D), jnp.float32)
        for h in range(NHEAD):                       # static unroll, 4 heads
            lo = h * HEAD_DIM
            s = _mm(q[:, lo:lo + HEAD_DIM], kt[lo:lo + HEAD_DIM, :])  # (R, R)
            s = s + attn_bias                        # mask cross-batch pairs
            s = s - jnp.max(s, axis=-1, keepdims=True)
            p = jnp.exp(s)
            p = p * pl.reciprocal(jnp.sum(p, axis=-1, keepdims=True),
                                  approx=False)
            acc = acc + _mm(p, vo[:, h * D:(h + 1) * D])
        src2 = acc + battn                           # v-bias & out-proj folded

        # --- src = norm2(src + linear2(relu(linear1(norm1(src2))))) ---
        # (dropouts identity at inference; residual structure matches the
        #  spec module: norm1 on attention output alone, final residual adds
        #  the layer-input src.)
        n1 = _layernorm(src2, g1, bt1)
        hdn = jnp.maximum(_mm(n1, w1) + b1, 0.0)     # relu, (R, DFF)
        ff = _mm(hdn, w2) + b2                       # (R, D)
        x = _layernorm(x + ff, g2, bt2)

    o_ref[...] = x.astype(o_ref.dtype)


# ----------------------------------------------------------------------------
# Wrapper-side packing (done ONCE, hoisted out of the per-call path).
# ----------------------------------------------------------------------------
def pack_layer(p):
    """Transpose PyTorch (out,in) weights to (in,out), fold scale & Wo."""
    scale = 1.0 / (HEAD_DIM ** 0.5)
    wq_t = p["wqkv"][0:D, :].T * scale               # scale folded into Wq
    wk_t = p["wqkv"][D:2 * D, :].T
    wv_t = p["wqkv"][2 * D:3 * D, :].T               # (D, D) in,out
    wo_t = p["wo"].T                                 # (D, D) concat-in, out
    # Per-head Wv_h @ Wo_h -> lane-dense (D, NHEAD*D) block.
    wvo = jnp.concatenate(
        [wv_t[:, h * HEAD_DIM:(h + 1) * HEAD_DIM]
         @ wo_t[h * HEAD_DIM:(h + 1) * HEAD_DIM, :] for h in range(NHEAD)],
        axis=1)

    def padc(a):
        return jnp.pad(a, ((0, 0), (0, WCOL - a.shape[1])))

    wmat = jnp.concatenate(
        [padc(wq_t), padc(wk_t), padc(wvo), padc(p["w1"].T), padc(p["w2"].T)],
        axis=0)                                      # (WROWS, 128)

    bq = p["bqkv"][:, 0:D] * scale                   # scale folded into bq
    bk = p["bqkv"][:, D:2 * D]
    bv = p["bqkv"][:, 2 * D:3 * D]
    battn = bv @ wo_t + p["bo"]                      # v-bias through Wo + bo
    rows = [bq, bk, battn, p["b1"], p["b2"],
            p["g1"], p["bt1"], p["g2"], p["bt2"]]
    vecs = jnp.concatenate([padc(a) for a in rows], axis=0)
    vecs = jnp.pad(vecs, ((0, VROWS - vecs.shape[0]), (0, 0)))  # (VROWS, 128)
    return wmat, vecs


def pack_stack(params_list):
    packed = [pack_layer(p) for p in params_list]
    wmat = jnp.concatenate([w for w, _ in packed], axis=0)
    vecs = jnp.concatenate([v for _, v in packed], axis=0)
    return wmat, vecs


def encoder_stack_forward(src, wmat, vecs, num_layers):
    """src: (S, B, D) seq-first; wmat/vecs: pre-packed stack weights."""
    x2 = src.reshape(R, D)                           # free reshape (s-major)
    vmem = pl.BlockSpec(memory_space=pltpu.MemorySpace.VMEM)
    out2 = pl.pallas_call(
        functools.partial(encoder_stack_kernel, num_layers=num_layers),
        out_shape=jax.ShapeDtypeStruct((R, D), src.dtype),
        in_specs=[vmem, vmem, vmem],
        out_specs=vmem,
    )(x2, wmat, vecs)
    return out2.reshape(S, B, D)                     # free reshape back


# ----------------------------------------------------------------------------
# Parameter init + pure-JAX reference (mirrors the PyTorch forward, eval mode)
# ----------------------------------------------------------------------------
def init_params(key):
    ks = jax.random.split(key, 8)
    return {
        "wqkv": 0.1 * jax.random.normal(ks[0], (3 * D, D), jnp.float32),
        "bqkv": 0.02 * jax.random.normal(ks[1], (1, 3 * D), jnp.float32),
        "wo":   0.1 * jax.random.normal(ks[2], (D, D), jnp.float32),
        "bo":   0.02 * jax.random.normal(ks[3], (1, D), jnp.float32),
        "w1":   0.1 * jax.random.normal(ks[4], (DFF, D), jnp.float32),
        "b1":   0.02 * jax.random.normal(ks[5], (1, DFF), jnp.float32),
        "w2":   0.1 * jax.random.normal(ks[6], (D, DFF), jnp.float32),
        "b2":   0.02 * jax.random.normal(ks[7], (1, D), jnp.float32),
        "g1":   jnp.ones((1, D), jnp.float32),
        "bt1":  jnp.zeros((1, D), jnp.float32),
        "g2":   jnp.ones((1, D), jnp.float32),
        "bt2":  jnp.zeros((1, D), jnp.float32),
    }


def reference(src, p):
    def lin(x, w, b):
        return jnp.einsum("sbd,od->sbo", x, w) + b[0]

    qkv = lin(src, p["wqkv"], p["bqkv"])
    q, k, v = jnp.split(qkv, 3, axis=-1)
    qh = q.reshape(S, B, NHEAD, HEAD_DIM)
    kh = k.reshape(S, B, NHEAD, HEAD_DIM)
    vh = v.reshape(S, B, NHEAD, HEAD_DIM)
    scale = 1.0 / (HEAD_DIM ** 0.5)
    scores = jnp.einsum("sbhd,tbhd->bhst", qh * scale, kh)
    w = jax.nn.softmax(scores, axis=-1)
    attn = jnp.einsum("bhst,tbhd->sbhd", w, vh).reshape(S, B, D)
    src2 = jnp.einsum("sbd,od->sbo", attn, p["wo"]) + p["bo"][0]

    def ln(x, g, b):
        mu = x.mean(-1, keepdims=True)
        var = ((x - mu) ** 2).mean(-1, keepdims=True)
        return (x - mu) / jnp.sqrt(var + EPS) * g[0] + b[0]

    n1 = ln(src2, p["g1"], p["bt1"])
    h = jax.nn.relu(jnp.einsum("sbd,fd->sbf", n1, p["w1"]) + p["b1"][0])
    ff = jnp.einsum("sbf,df->sbd", h, p["w2"]) + p["b2"][0]
    return ln(src + ff, p["g2"], p["bt2"])


if __name__ == "__main__":
    key = jax.random.PRNGKey(0)
    k_x, k0, k1, k2 = jax.random.split(key, 4)
    src = jax.random.normal(k_x, (S, B, D), jnp.float32)   # (seq, batch, d_model)
    layers = [init_params(k0), init_params(k1), init_params(k2)]

    # --- Single layer: exact semantics of the spec module (eval mode). ---
    w1m, v1m = pack_stack(layers[:1])                # packed once, reusable
    out1 = jax.block_until_ready(encoder_stack_forward(src, w1m, v1m, 1))
    ref1 = reference(src, layers[0])
    assert out1.shape == (S, B, D)
    err1 = float(jnp.max(jnp.abs(out1 - ref1)))
    assert jnp.allclose(out1, ref1, atol=1e-3, rtol=1e-3), f"1-layer err {err1}"

    # --- Fused 3-layer stack in ONE pallas_call (amortized invocation). ---
    w3m, v3m = pack_stack(layers)
    out3 = jax.block_until_ready(encoder_stack_forward(src, w3m, v3m, 3))
    ref3 = src
    for p in layers:
        ref3 = reference(ref3, p)
    err3 = float(jnp.max(jnp.abs(out3 - ref3)))
    assert jnp.allclose(out3, ref3, atol=1e-3, rtol=1e-3), f"3-layer err {err3}"

    print("KERNEL_OK")
</pallas_src>

<mosaic_0001>
module attributes {stable_mosaic.version = 11 : i64} {
  func.func @encoder_stack_kernel(%arg0: memref<16x32xf32, #tpu.memory_space<vmem>>, %arg1: memref<192x128xf32, #tpu.memory_space<vmem>>, %arg2: memref<16x128xf32, #tpu.memory_space<vmem>>, %arg3: memref<16x32xf32, #tpu.memory_space<vmem>>) attributes {dimension_semantics = [], scalar_prefetch = 0 : i64, scratch_operands = 0 : i64, tpu.core_type = #tpu.core_type<tc>} {
    %c0 = arith.constant 0 : index
    %c0_0 = arith.constant 0 : index
    %0 = vector.load %arg0[%c0, %c0_0] : memref<16x32xf32, #tpu.memory_space<vmem>>, vector<16x32xf32>
    %1 = tpu.iota {dimensions = array<i32: 0>} : vector<16x16xi32>
    %2 = tpu.iota {dimensions = array<i32: 1>} : vector<16x16xi32>
    %c2_i32 = arith.constant 2 : i32
    %c0_i32 = arith.constant 0 : i32
    %3 = arith.cmpi eq, %c2_i32, %c0_i32 : i32
    %c1_i32 = arith.constant 1 : i32
    %4 = arith.select %3, %c1_i32, %c2_i32 : i32
    %5 = vector.broadcast %4 : i32 to vector<16x16xi32>
    %6 = arith.remsi %1, %5 : vector<16x16xi32>
    %c0_i32_1 = arith.constant 0 : i32
    %7 = vector.broadcast %c0_i32_1 : i32 to vector<16x16xi32>
    %8 = arith.cmpi ne, %6, %7 : vector<16x16xi32>
    %c0_i32_2 = arith.constant 0 : i32
    %9 = vector.broadcast %c0_i32_2 : i32 to vector<16x16xi32>
    %10 = arith.cmpi slt, %6, %9 : vector<16x16xi32>
    %c0_i32_3 = arith.constant 0 : i32
    %11 = arith.cmpi slt, %4, %c0_i32_3 : i32
    %12 = vector.broadcast %11 : i1 to vector<16x16xi1>
    %13 = vector.broadcast %12 : vector<16x16xi1> to vector<16x16xi1>
    %14 = arith.xori %10, %13 : vector<16x16xi1>
    %15 = arith.andi %14, %8 : vector<16x16xi1>
    %16 = vector.broadcast %4 : i32 to vector<16x16xi32>
    %17 = arith.addi %6, %16 : vector<16x16xi32>
    %18 = arith.select %15, %17, %6 : vector<16x16xi1>, vector<16x16xi32>
    %c2_i32_4 = arith.constant 2 : i32
    %c0_i32_5 = arith.constant 0 : i32
    %19 = arith.cmpi eq, %c2_i32_4, %c0_i32_5 : i32
    %c1_i32_6 = arith.constant 1 : i32
    %20 = arith.select %19, %c1_i32_6, %c2_i32_4 : i32
    %21 = vector.broadcast %20 : i32 to vector<16x16xi32>
    %22 = arith.remsi %2, %21 : vector<16x16xi32>
    %c0_i32_7 = arith.constant 0 : i32
    %23 = vector.broadcast %c0_i32_7 : i32 to vector<16x16xi32>
    %24 = arith.cmpi ne, %22, %23 : vector<16x16xi32>
    %c0_i32_8 = arith.constant 0 : i32
    %25 = vector.broadcast %c0_i32_8 : i32 to vector<16x16xi32>
    %26 = arith.cmpi slt, %22, %25 : vector<16x16xi32>
    %c0_i32_9 = arith.constant 0 : i32
    %27 = arith.cmpi slt, %20, %c0_i32_9 : i32
    %28 = vector.broadcast %27 : i1 to vector<16x16xi1>
    %29 = vector.broadcast %28 : vector<16x16xi1> to vector<16x16xi1>
    %30 = arith.xori %26, %29 : vector<16x16xi1>
    %31 = arith.andi %30, %24 : vector<16x16xi1>
    %32 = vector.broadcast %20 : i32 to vector<16x16xi32>
    %33 = arith.addi %22, %32 : vector<16x16xi32>
    %34 = arith.select %31, %33, %22 : vector<16x16xi1>, vector<16x16xi32>
    %35 = arith.cmpi eq, %18, %34 : vector<16x16xi32>
    %cst = arith.constant 0.000000e+00 : f32
    %cst_10 = arith.constant -1.000000e+30 : f32
    %36 = vector.broadcast %cst : f32 to vector<16x16xf32>
    %37 = vector.broadcast %cst_10 : f32 to vector<16x16xf32>
    %38 = arith.select %35, %36, %37 : vector<16x16xi1>, vector<16x16xf32>
    %c0_11 = arith.constant 0 : index
    %c0_12 = arith.constant 0 : index
    %39 = vector.load %arg1[%c0_11, %c0_12] : memref<192x128xf32, #tpu.memory_space<vmem>>, vector<32x32xf32>
    %c32 = arith.constant 32 : index
    %c0_13 = arith.constant 0 : index
    %40 = vector.load %arg1[%c32, %c0_13] : memref<192x128xf32, #tpu.memory_space<vmem>>, vector<32x32xf32>
    %c64 = arith.constant 64 : index
    %c0_14 = arith.constant 0 : index
    %41 = vector.load %arg1[%c64, %c0_14] : memref<192x128xf32, #tpu.memory_space<vmem>>, vector<32x128xf32>
    %c96 = arith.constant 96 : index
    %c0_15 = arith.constant 0 : index
    %42 = vector.load %arg1[%c96, %c0_15] : memref<192x128xf32, #tpu.memory_space<vmem>>, vector<32x64xf32>
    %c128 = arith.constant 128 : index
    %c0_16 = arith.constant 0 : index
    %43 = vector.load %arg1[%c128, %c0_16] : memref<192x128xf32, #tpu.memory_space<vmem>>, vector<64x32xf32>
    %c0_17 = arith.constant 0 : index
    %c0_18 = arith.constant 0 : index
    %44 = vector.load %arg2[%c0_17, %c0_18] : memref<16x128xf32, #tpu.memory_space<vmem>>, vector<1x32xf32>
    %c1 = arith.constant 1 : index
    %c0_19 = arith.constant 0 : index
    %45 = vector.load %arg2[%c1, %c0_19] : memref<16x128xf32, #tpu.memory_space<vmem>>, vector<1x32xf32>
    %c2 = arith.constant 2 : index
    %c0_20 = arith.constant 0 : index
    %46 = vector.load %arg2[%c2, %c0_20] : memref<16x128xf32, #tpu.memory_space<vmem>>, vector<1x32xf32>
    %c3 = arith.constant 3 : index
    %c0_21 = arith.constant 0 : index
    %47 = vector.load %arg2[%c3, %c0_21] : memref<16x128xf32, #tpu.memory_space<vmem>>, vector<1x64xf32>
    %c4 = arith.constant 4 : index
    %c0_22 = arith.constant 0 : index
    %48 = vector.load %arg2[%c4, %c0_22] : memref<16x128xf32, #tpu.memory_space<vmem>>, vector<1x32xf32>
    %c5 = arith.constant 5 : index
    %c0_23 = arith.constant 0 : index
    %49 = vector.load %arg2[%c5, %c0_23] : memref<16x128xf32, #tpu.memory_space<vmem>>, vector<1x32xf32>
    %c6 = arith.constant 6 : index
    %c0_24 = arith.constant 0 : index
    %50 = vector.load %arg2[%c6, %c0_24] : memref<16x128xf32, #tpu.memory_space<vmem>>, vector<1x32xf32>
    %c7 = arith.constant 7 : index
    %c0_25 = arith.constant 0 : index
    %51 = vector.load %arg2[%c7, %c0_25] : memref<16x128xf32, #tpu.memory_space<vmem>>, vector<1x32xf32>
    %c8 = arith.constant 8 : index
    %c0_26 = arith.constant 0 : index
    %52 = vector.load %arg2[%c8, %c0_26] : memref<16x128xf32, #tpu.memory_space<vmem>>, vector<1x32xf32>
    %cst_27 = arith.constant dense<0.000000e+00> : vector<16x32xf32>
    %53 = tpu.matmul %0, %39, %cst_27 {dimension_numbers = #tpu.dot_dimension_numbers<[1], [0], [0], [1], [0, 0, 1, 1], [], []>} : vector<16x32xf32>, vector<32x32xf32>, vector<16x32xf32> -> vector<16x32xf32>
    %54 = vector.broadcast %44 : vector<1x32xf32> to vector<16x32xf32>
    %55 = arith.addf %53, %54 : vector<16x32xf32>
    %cst_28 = arith.constant dense<0.000000e+00> : vector<16x32xf32>
    %56 = tpu.matmul %0, %40, %cst_28 {dimension_numbers = #tpu.dot_dimension_numbers<[1], [0], [0], [1], [0, 0, 1, 1], [], []>} : vector<16x32xf32>, vector<32x32xf32>, vector<16x32xf32> -> vector<16x32xf32>
    %57 = vector.broadcast %45 : vector<1x32xf32> to vector<16x32xf32>
    %58 = arith.addf %56, %57 : vector<16x32xf32>
    %59 = tpu.transpose %58, [1, 0] : vector<16x32xf32> -> vector<32x16xf32>
    %cst_29 = arith.constant dense<0.000000e+00> : vector<16x128xf32>
    %60 = tpu.matmul %0, %41, %cst_29 {dimension_numbers = #tpu.dot_dimension_numbers<[1], [0], [0], [1], [0, 0, 1, 1], [], []>} : vector<16x32xf32>, vector<32x128xf32>, vector<16x128xf32> -> vector<16x128xf32>
    %cst_30 = arith.constant 0.000000e+00 : f32
    %61 = vector.broadcast %cst_30 : f32 to vector<16x32xf32>
    %62 = vector.extract_strided_slice %55 {offsets = [0, 0], sizes = [16, 8], strides = [1, 1]} : vector<16x32xf32> to vector<16x8xf32>
    %63 = vector.extract_strided_slice %59 {offsets = [0, 0], sizes = [8, 16], strides = [1, 1]} : vector<32x16xf32> to vector<8x16xf32>
    %cst_31 = arith.constant dense<0.000000e+00> : vector<16x16xf32>
    %64 = tpu.matmul %62, %63, %cst_31 {dimension_numbers = #tpu.dot_dimension_numbers<[1], [0], [0], [1], [0, 0, 1, 1], [], []>} : vector<16x8xf32>, vector<8x16xf32>, vector<16x16xf32> -> vector<16x16xf32>
    %65 = arith.addf %64, %38 : vector<16x16xf32>
    %cst_32 = arith.constant dense<0xFF800000> : vector<16xf32>
    %66 = vector.multi_reduction <maximumf>, %65, %cst_32 [1] : vector<16x16xf32> to vector<16xf32>
    %67 = vector.shape_cast %66 : vector<16xf32> to vector<16x1xf32>
    %68 = vector.broadcast %67 : vector<16x1xf32> to vector<16x16xf32>
    %69 = arith.subf %65, %68 : vector<16x16xf32>
    %70 = math.exp %69 : vector<16x16xf32>
    %cst_33 = arith.constant dense<0.000000e+00> : vector<16xf32>
    %71 = vector.multi_reduction <add>, %70, %cst_33 [1] : vector<16x16xf32> to vector<16xf32>
    %72 = vector.shape_cast %71 : vector<16xf32> to vector<16x1xf32>
    %73 = tpu.reciprocal %72 : vector<16x1xf32> -> vector<16x1xf32>
    %74 = vector.broadcast %73 : vector<16x1xf32> to vector<16x16xf32>
    %75 = arith.mulf %70, %74 : vector<16x16xf32>
    %76 = vector.extract_strided_slice %60 {offsets = [0, 0], sizes = [16, 32], strides = [1, 1]} : vector<16x128xf32> to vector<16x32xf32>
    %cst_34 = arith.constant dense<0.000000e+00> : vector<16x32xf32>
    %77 = tpu.matmul %75, %76, %cst_34 {dimension_numbers = #tpu.dot_dimension_numbers<[1], [0], [0], [1], [0, 0, 1, 1], [], []>} : vector<16x16xf32>, vector<16x32xf32>, vector<16x32xf32> -> vector<16x32xf32>
    %78 = arith.addf %61, %77 : vector<16x32xf32>
    %79 = vector.extract_strided_slice %55 {offsets = [0, 8], sizes = [16, 8], strides = [1, 1]} : vector<16x32xf32> to vector<16x8xf32>
    %80 = vector.extract_strided_slice %59 {offsets = [8, 0], sizes = [8, 16], strides = [1, 1]} : vector<32x16xf32> to vector<8x16xf32>
    %cst_35 = arith.constant dense<0.000000e+00> : vector<16x16xf32>
    %81 = tpu.matmul %79, %80, %cst_35 {dimension_numbers = #tpu.dot_dimension_numbers<[1], [0], [0], [1], [0, 0, 1, 1], [], []>} : vector<16x8xf32>, vector<8x16xf32>, vector<16x16xf32> -> vector<16x16xf32>
    %82 = arith.addf %81, %38 : vector<16x16xf32>
    %cst_36 = arith.constant dense<0xFF800000> : vector<16xf32>
    %83 = vector.multi_reduction <maximumf>, %82, %cst_36 [1] : vector<16x16xf32> to vector<16xf32>
    %84 = vector.shape_cast %83 : vector<16xf32> to vector<16x1xf32>
    %85 = vector.broadcast %84 : vector<16x1xf32> to vector<16x16xf32>
    %86 = arith.subf %82, %85 : vector<16x16xf32>
    %87 = math.exp %86 : vector<16x16xf32>
    %cst_37 = arith.constant dense<0.000000e+00> : vector<16xf32>
    %88 = vector.multi_reduction <add>, %87, %cst_37 [1] : vector<16x16xf32> to vector<16xf32>
    %89 = vector.shape_cast %88 : vector<16xf32> to vector<16x1xf32>
    %90 = tpu.reciprocal %89 : vector<16x1xf32> -> vector<16x1xf32>
    %91 = vector.broadcast %90 : vector<16x1xf32> to vector<16x16xf32>
    %92 = arith.mulf %87, %91 : vector<16x16xf32>
    %93 = vector.extract_strided_slice %60 {offsets = [0, 32], sizes = [16, 32], strides = [1, 1]} : vector<16x128xf32> to vector<16x32xf32>
    %cst_38 = arith.constant dense<0.000000e+00> : vector<16x32xf32>
    %94 = tpu.matmul %92, %93, %cst_38 {dimension_numbers = #tpu.dot_dimension_numbers<[1], [0], [0], [1], [0, 0, 1, 1], [], []>} : vector<16x16xf32>, vector<16x32xf32>, vector<16x32xf32> -> vector<16x32xf32>
    %95 = arith.addf %78, %94 : vector<16x32xf32>
    %96 = vector.extract_strided_slice %55 {offsets = [0, 16], sizes = [16, 8], strides = [1, 1]} : vector<16x32xf32> to vector<16x8xf32>
    %97 = vector.extract_strided_slice %59 {offsets = [16, 0], sizes = [8, 16], strides = [1, 1]} : vector<32x16xf32> to vector<8x16xf32>
    %cst_39 = arith.constant dense<0.000000e+00> : vector<16x16xf32>
    %98 = tpu.matmul %96, %97, %cst_39 {dimension_numbers = #tpu.dot_dimension_numbers<[1], [0], [0], [1], [0, 0, 1, 1], [], []>} : vector<16x8xf32>, vector<8x16xf32>, vector<16x16xf32> -> vector<16x16xf32>
    %99 = arith.addf %98, %38 : vector<16x16xf32>
    %cst_40 = arith.constant dense<0xFF800000> : vector<16xf32>
    %100 = vector.multi_reduction <maximumf>, %99, %cst_40 [1] : vector<16x16xf32> to vector<16xf32>
    %101 = vector.shape_cast %100 : vector<16xf32> to vector<16x1xf32>
    %102 = vector.broadcast %101 : vector<16x1xf32> to vector<16x16xf32>
    %103 = arith.subf %99, %102 : vector<16x16xf32>
    %104 = math.exp %103 : vector<16x16xf32>
    %cst_41 = arith.constant dense<0.000000e+00> : vector<16xf32>
    %105 = vector.multi_reduction <add>, %104, %cst_41 [1] : vector<16x16xf32> to vector<16xf32>
    %106 = vector.shape_cast %105 : vector<16xf32> to vector<16x1xf32>
    %107 = tpu.reciprocal %106 : vector<16x1xf32> -> vector<16x1xf32>
    %108 = vector.broadcast %107 : vector<16x1xf32> to vector<16x16xf32>
    %109 = arith.mulf %104, %108 : vector<16x16xf32>
    %110 = vector.extract_strided_slice %60 {offsets = [0, 64], sizes = [16, 32], strides = [1, 1]} : vector<16x128xf32> to vector<16x32xf32>
    %cst_42 = arith.constant dense<0.000000e+00> : vector<16x32xf32>
    %111 = tpu.matmul %109, %110, %cst_42 {dimension_numbers = #tpu.dot_dimension_numbers<[1], [0], [0], [1], [0, 0, 1, 1], [], []>} : vector<16x16xf32>, vector<16x32xf32>, vector<16x32xf32> -> vector<16x32xf32>
    %112 = arith.addf %95, %111 : vector<16x32xf32>
    %113 = vector.extract_strided_slice %55 {offsets = [0, 24], sizes = [16, 8], strides = [1, 1]} : vector<16x32xf32> to vector<16x8xf32>
    %114 = vector.extract_strided_slice %59 {offsets = [24, 0], sizes = [8, 16], strides = [1, 1]} : vector<32x16xf32> to vector<8x16xf32>
    %cst_43 = arith.constant dense<0.000000e+00> : vector<16x16xf32>
    %115 = tpu.matmul %113, %114, %cst_43 {dimension_numbers = #tpu.dot_dimension_numbers<[1], [0], [0], [1], [0, 0, 1, 1], [], []>} : vector<16x8xf32>, vector<8x16xf32>, vector<16x16xf32> -> vector<16x16xf32>
    %116 = arith.addf %115, %38 : vector<16x16xf32>
    %cst_44 = arith.constant dense<0xFF800000> : vector<16xf32>
    %117 = vector.multi_reduction <maximumf>, %116, %cst_44 [1] : vector<16x16xf32> to vector<16xf32>
    %118 = vector.shape_cast %117 : vector<16xf32> to vector<16x1xf32>
    %119 = vector.broadcast %118 : vector<16x1xf32> to vector<16x16xf32>
    %120 = arith.subf %116, %119 : vector<16x16xf32>
    %121 = math.exp %120 : vector<16x16xf32>
    %cst_45 = arith.constant dense<0.000000e+00> : vector<16xf32>
    %122 = vector.multi_reduction <add>, %121, %cst_45 [1] : vector<16x16xf32> to vector<16xf32>
    %123 = vector.shape_cast %122 : vector<16xf32> to vector<16x1xf32>
    %124 = tpu.reciprocal %123 : vector<16x1xf32> -> vector<16x1xf32>
    %125 = vector.broadcast %124 : vector<16x1xf32> to vector<16x16xf32>
    %126 = arith.mulf %121, %125 : vector<16x16xf32>
    %127 = vector.extract_strided_slice %60 {offsets = [0, 96], sizes = [16, 32], strides = [1, 1]} : vector<16x128xf32> to vector<16x32xf32>
    %cst_46 = arith.constant dense<0.000000e+00> : vector<16x32xf32>
    %128 = tpu.matmul %126, %127, %cst_46 {dimension_numbers = #tpu.dot_dimension_numbers<[1], [0], [0], [1], [0, 0, 1, 1], [], []>} : vector<16x16xf32>, vector<16x32xf32>, vector<16x32xf32> -> vector<16x32xf32>
    %129 = arith.addf %112, %128 : vector<16x32xf32>
    %130 = vector.broadcast %46 : vector<1x32xf32> to vector<16x32xf32>
    %131 = arith.addf %129, %130 : vector<16x32xf32>
    %cst_47 = arith.constant dense<0.000000e+00> : vector<16xf32>
    %132 = vector.multi_reduction <add>, %131, %cst_47 [1] : vector<16x32xf32> to vector<16xf32>
    %133 = vector.shape_cast %132 : vector<16xf32> to vector<16x1xf32>
    %cst_48 = arith.constant 3.200000e+01 : f32
    %134 = vector.broadcast %cst_48 : f32 to vector<16x1xf32>
    %135 = arith.divf %133, %134 : vector<16x1xf32>
    %136 = vector.broadcast %135 : vector<16x1xf32> to vector<16x32xf32>
    %137 = arith.subf %131, %136 : vector<16x32xf32>
    %138 = arith.mulf %137, %137 : vector<16x32xf32>
    %cst_49 = arith.constant dense<0.000000e+00> : vector<16xf32>
    %139 = vector.multi_reduction <add>, %138, %cst_49 [1] : vector<16x32xf32> to vector<16xf32>
    %140 = vector.shape_cast %139 : vector<16xf32> to vector<16x1xf32>
    %cst_50 = arith.constant 3.200000e+01 : f32
    %141 = vector.broadcast %cst_50 : f32 to vector<16x1xf32>
    %142 = arith.divf %140, %141 : vector<16x1xf32>
    %143 = vector.broadcast %135 : vector<16x1xf32> to vector<16x32xf32>
    %144 = arith.subf %131, %143 : vector<16x32xf32>
    %cst_51 = arith.constant 9.99999974E-6 : f32
    %145 = vector.broadcast %cst_51 : f32 to vector<16x1xf32>
    %146 = arith.addf %142, %145 : vector<16x1xf32>
    %147 = math.rsqrt %146 : vector<16x1xf32>
    %148 = vector.broadcast %147 : vector<16x1xf32> to vector<16x32xf32>
    %149 = arith.mulf %144, %148 : vector<16x32xf32>
    %150 = vector.broadcast %49 : vector<1x32xf32> to vector<16x32xf32>
    %151 = arith.mulf %149, %150 : vector<16x32xf32>
    %152 = vector.broadcast %50 : vector<1x32xf32> to vector<16x32xf32>
    %153 = arith.addf %151, %152 : vector<16x32xf32>
    %cst_52 = arith.constant dense<0.000000e+00> : vector<16x64xf32>
    %154 = tpu.matmul %153, %42, %cst_52 {dimension_numbers = #tpu.dot_dimension_numbers<[1], [0], [0], [1], [0, 0, 1, 1], [], []>} : vector<16x32xf32>, vector<32x64xf32>, vector<16x64xf32> -> vector<16x64xf32>
    %155 = vector.broadcast %47 : vector<1x64xf32> to vector<16x64xf32>
    %156 = arith.addf %154, %155 : vector<16x64xf32>
    %cst_53 = arith.constant 0.000000e+00 : f32
    %157 = vector.broadcast %cst_53 : f32 to vector<16x64xf32>
    %158 = arith.maximumf %156, %157 : vector<16x64xf32>
    %cst_54 = arith.constant dense<0.000000e+00> : vector<16x32xf32>
    %159 = tpu.matmul %158, %43, %cst_54 {dimension_numbers = #tpu.dot_dimension_numbers<[1], [0], [0], [1], [0, 0, 1, 1], [], []>} : vector<16x64xf32>, vector<64x32xf32>, vector<16x32xf32> -> vector<16x32xf32>
    %160 = vector.broadcast %48 : vector<1x32xf32> to vector<16x32xf32>
    %161 = arith.addf %159, %160 : vector<16x32xf32>
    %162 = arith.addf %0, %161 : vector<16x32xf32>
    %cst_55 = arith.constant dense<0.000000e+00> : vector<16xf32>
    %163 = vector.multi_reduction <add>, %162, %cst_55 [1] : vector<16x32xf32> to vector<16xf32>
    %164 = vector.shape_cast %163 : vector<16xf32> to vector<16x1xf32>
    %cst_56 = arith.constant 3.200000e+01 : f32
    %165 = vector.broadcast %cst_56 : f32 to vector<16x1xf32>
    %166 = arith.divf %164, %165 : vector<16x1xf32>
    %167 = vector.broadcast %166 : vector<16x1xf32> to vector<16x32xf32>
    %168 = arith.subf %162, %167 : vector<16x32xf32>
    %169 = arith.mulf %168, %168 : vector<16x32xf32>
    %cst_57 = arith.constant dense<0.000000e+00> : vector<16xf32>
    %170 = vector.multi_reduction <add>, %169, %cst_57 [1] : vector<16x32xf32> to vector<16xf32>
    %171 = vector.shape_cast %170 : vector<16xf32> to vector<16x1xf32>
    %cst_58 = arith.constant 3.200000e+01 : f32
    %172 = vector.broadcast %cst_58 : f32 to vector<16x1xf32>
    %173 = arith.divf %171, %172 : vector<16x1xf32>
    %174 = vector.broadcast %166 : vector<16x1xf32> to vector<16x32xf32>
    %175 = arith.subf %162, %174 : vector<16x32xf32>
    %cst_59 = arith.constant 9.99999974E-6 : f32
    %176 = vector.broadcast %cst_59 : f32 to vector<16x1xf32>
    %177 = arith.addf %173, %176 : vector<16x1xf32>
    %178 = math.rsqrt %177 : vector<16x1xf32>
    %179 = vector.broadcast %178 : vector<16x1xf32> to vector<16x32xf32>
    %180 = arith.mulf %175, %179 : vector<16x32xf32>
    %181 = vector.broadcast %51 : vector<1x32xf32> to vector<16x32xf32>
    %182 = arith.mulf %180, %181 : vector<16x32xf32>
    %183 = vector.broadcast %52 : vector<1x32xf32> to vector<16x32xf32>
    %184 = arith.addf %182, %183 : vector<16x32xf32>
    %c0_60 = arith.constant 0 : index
    %c0_61 = arith.constant 0 : index
    %185 = vector.load %arg3[%c0_60, %c0_61] : memref<16x32xf32, #tpu.memory_space<vmem>>, vector<16x32xf32>
    tpu.vector_store %arg3[%c0_60, %c0_61], %184 {strides = array<i32>} : memref<16x32xf32, #tpu.memory_space<vmem>>, vector<16x32xf32>,
    return
  }
}

</mosaic_0001>

<bundles_post_ra>
// kernel: tpu_custom_call.1
= control target key start
LH: loop header
LB: loop body
LE: loop exit
PB: predicated region body
PF: predicated region fallthrough
CT: control target
= control target key end

     0   :  { %8 = vsyncpa [#allocation3], 0  ;;  %s1349_s0 = inlined_call_operand.hbm [shape: f32[16,32], index: 0, kind: input, shape index: {}]   ;;  %s1350_s1 = inlined_call_operand.hbm [shape: f32[192,128], index: 1, kind: input, shape index: {}]   ;;  %s1351_s2 = inlined_call_operand.hbm [shape: f32[16,128], index: 2, kind: input, shape index: {}]   ;;  %s1352_s3 = inlined_call_operand.hbm [shape: f32[16,32], index: 3, kind: output, shape index: {}]  }
   0x1   :  { %9 = vsyncpa [#allocation6], 0 }
   0x2   :  { %10 = vsyncpa [#allocation4], 0  ;;  %s28_s14 = sshll.u32 %s1350_s1, 4  ;;  %s1123_s15 = smov [#allocation5]   ;;  %s29_s14 = int_to_ptr.hbm [resolvable:$true] %s28_s14 }
   0x3   :  { %s30_s16 = sshll.u32 %s1123_s15, 4  ;;  %s15_s19 = sshll.u32 %s1349_s0, 4  ;;  %s31_s16 = int_to_ptr.vmem [resolvable:$true] %s30_s16  ;;  %s16_s19 = int_to_ptr.hbm [resolvable:$true] %s15_s19 }
   0x4   :  { %s1124_s20 = smov 128   ;;  %s1125_s21 = smov 8  }
   0x5   :  { %36 = dma.hbm_to_vmem [thread:$0]  %s29_s14, 3072, %s31_s16, [#allocation6], %s1124_s20, %s1124_s20, %s1125_s21  }
   0x6   :  { %s1126_s22 = smov [#allocation2]   ;;  %s41_s1 = sshll.u32 %s1351_s2, 4  ;;  %s42_s1 = int_to_ptr.hbm [resolvable:$true] %s41_s1 }
   0x7   :  { %s17_s23 = sshll.u32 %s1126_s22, 4  ;;  %s1127_s0 = smov [#allocation7]   ;;  %s18_s23 = int_to_ptr.vmem [resolvable:$true] %s17_s23 }
   0x8   :  { %23 = dma.hbm_to_vmem [thread:$0]  %s16_s19, 256, %s18_s23, [#allocation3], %s1124_s20, %s1124_s20, %s1125_s21  }
   0x9   :  { %s43_s26 = sshll.u32 %s1127_s0, 4  ;;  %s44_s26 = int_to_ptr.vmem [resolvable:$true] %s43_s26 }
   0xa   :  { %49 = dma.hbm_to_vmem [thread:$0]  %s42_s1, 256, %s44_s26, [#allocation6], %s1124_s20, %s1124_s20, %s1125_s21  }
   0xb   :  { %1117 = dma.done.wait [#allocation3], 256  }
   0xc   :  { %1118 = vsyncadd [#allocation3], 4294967040 }
   0xd   :  { %1119 = dma.done.wait [#allocation6], 3328  }
   0xe   :  { %1120 = vsyncadd [#allocation6], 4294963968  ;;  %v112_v0 = vld [vmem:[#allocation5 + $0x18] sm:$0xff]  ;;  %v111_v1 = vld [vmem:[#allocation5 + $0x10] sm:$0xff]  ;;  %vm143_vm0 = vcmask 261120   ;;  %s1128_s2 = smov 120   ;;  %v64_v28 = vlaneseq }
   0xf   :  { %162 = vmatpush.msra.mxu0 %v112_v0  ;;  %937 = vmatpush.msra.mxu1 %v112_v0  ;;  %v110_v2 = vld [vmem:[#allocation5 + $0x8] sm:$0xff]  ;;  %v109_v3 = vld [vmem:[#allocation5] sm:$0xff]  ;;  %v1175_v4 = vld [vmem:[#allocation2] sm:$0xff]  ;;  %vm220_vm1 = vcmask 64512   ;;  %v1129_v35 = vmov -1e+30  }
  0x10   :  { %v1177_v5 = vld [vmem:[#allocation2 + $0x8] sm:$0xff]  ;;  %v115_v7 = vld [vmem:[#allocation5 + $0x30] sm:$0xff]  ;;  %v114_v8 = vld [vmem:[#allocation5 + $0x28] sm:$0xff]  ;;  %v65_v29 = vshrl.u32 %v64_v28, 7  ;;  %v68_v30 = vand.u32 127, %v64_v28  ;;  %vm256_vm3 = vcmask 130048  }
  0x11   :  { %163 = vmatpush.msra.mxu0 %v111_v1  ;;  %938 = vmatpush.msra.mxu1 %v111_v1  ;;  %v116_v6 = vld [vmem:[#allocation5 + $0x38] sm:$0xff]  ;;  %v113_v9 = vld [vmem:[#allocation5 + $0x20] sm:$0xff]  ;;  %v119_v21 = vld [vmem:[#allocation5 + $0x50] sm:$0xff]  ;;  %s1130_s27 = smov 96   ;;  %s1131_s28 = smov 112  }
  0x12   :  { %v970_v10 = vld [vmem:[#allocation7] ss:$0 sm:$0xff]  ;;  %v971_v16 = vld [vmem:[#allocation7 + $0x1] ss:$0 sm:$0xff]  ;;  %v120_v20 = vld [vmem:[#allocation5 + $0x58] sm:$0xff]  ;;  %v73_v31 = vand.u32 1, %v65_v29 }
  0x13   :  { %164 = vmatpush.msra.mxu0 %v110_v2  ;;  %939 = vmatpush.msra.mxu1 %v110_v2  ;;  %v118_v22 = vld [vmem:[#allocation5 + $0x48] sm:$0xff]  ;;  %v117_v23 = vld [vmem:[#allocation5 + $0x40] sm:$0xff]  ;;  %v97_v32 = vand.u32 1, %v68_v30  ;;  %v66_v34 = vadd.s32 8, %v65_v29  ;;  %s1132_s29 = smov 104   ;;  %s1133_s30 = smov 32  }
  0x14   :  { %209 = vmatpush.msra.mxu2 %v120_v20  ;;  %s1134_s4 = smov 64   ;;  %s1136_s5 = smov [#allocation8]  }
  0x15   :  { %165 = vmatpush.msra.mxu0 %v109_v3  ;;  %940 = vmatpush.msra.mxu1 %v109_v3  ;;  %vm105_vm2 = vcmp.eq.s32.totalorder %v73_v31, %v97_v32  ;;  %v80_v38 = vand.u32 1, %v66_v34  ;;  %s887_s6 = sshll.u32 %s1136_s5, 4  ;;  %s889_s9 = sshll.u32 %s1352_s3, 4  ;;  %s888_s6 = int_to_ptr.vmem [resolvable:$true] %s887_s6  ;;  %s890_s9 = int_to_ptr.hbm [resolvable:$true] %s889_s9 }
  0x16   :  { %903 = vmatmul.msk.f32.vlgmr.msra.gmra.mxu0 %vm143_vm0, %v1175_v4  ;;  %904 = vmatmul.msk.f32.vlgmr.msra.gmra.mxu1 %vm143_vm0, %v1177_v5  ;;  %v1211_v36 = vsel %vm105_vm2, 0.0, %v1129_v35 }
  0x17   :  { %186 = vmatpush.msrb.mxu1 %v116_v6  ;;  %210 = vmatpush.msra.mxu2 %v119_v21  ;;  %vm106_vm4 = vcmp.eq.s32.totalorder %v80_v38, %v97_v32 }
  0x18   :  { %v1215_v42 = vsel %vm106_vm4, 0.0, %v1129_v35 }
  0x19   :  { %187 = vmatpush.msrb.mxu1 %v115_v7  ;;  %211 = vmatpush.msra.mxu2 %v118_v22 }
  0x1b   :  { %188 = vmatpush.msrb.mxu1 %v114_v8  ;;  %212 = vmatpush.msra.mxu2 %v117_v23 }
  0x1c   :  { %907 = vmatmul.msk.f32.vlgmr.msra.gmra.mxu2 %vm143_vm0, %v1175_v4 }
  0x1d   :  { %189 = vmatpush.msrb.mxu1 %v113_v9 }
  0x1e   :  { %905 = vmatmul.msk.f32.vlgmr.msrb.gmra.mxu1 %vm143_vm0, %v1175_v4 }
  0x24   :  { %908 = vmatmul.msk.f32.gmra.mxu2 %vm143_vm0, %v1177_v5 }
  0x26   :  { %906 = vmatmul.msk.f32.gmra.mxu1 %vm143_vm0, %v1177_v5 }
  0x93   :  { %v167_v11 = vpop.f32.mrf.mxu0  ;;  %v170_v12 = vpop.f32.mrf.mxu1 }
  0x94   :  { %v1187_v13 = vadd.f32 %v970_v10, %v167_v11  ;;  %v1190_v15 = vadd.f32 %v970_v10, %v170_v12 }
  0x96   :  { %305 = vrot.lane.b32.xlu1 %v1187_v13, %s1128_s2 }
  0x9b   :  { %v191_v14 = vpop.f32.mrf.mxu1 }
  0x9c   :  { %v1194_v19 = vadd.f32 %v971_v16, %v191_v14 }
  0x9e   :  { %307 = vrot.lane.b32.xlu1 %v1190_v15, %s1128_s2 }
  0x9f   :  { %v214_v33 = vpop.f32.mrf.mxu2 }
  0xa3   :  { %v194_v17 = vpop.f32.mrf.mxu1 }
  0xa4   :  { %v195_v18 = vadd.f32 %v971_v16, %v194_v17 }
  0xa6   :  { %311 = vrot.lane.b32.xlu0 %v195_v18, %s1128_s2  ;;  %909 = vmatpush.xpose.msk.msra.mxu3 %vm220_vm1, %v195_v18 }
  0xa7   :  { %v217_v40 = vpop.f32.mrf.mxu2 }
  0xa8   :  { %449 = vmatpush.msrb.mxu2 %v217_v40  ;;  %v1219_v46 = vpack.i.bf16 %v214_v33, %v217_v40 }
  0xaa   :  { %910 = vmatpush.xpose.msk.msra.mxu3 %vm220_vm1, %v1194_v19  ;;  %450 = vmatpush.msrb.mxu2 %v214_v33 }
  0xad   :  { %911 = vmatmul.msk.f32.vlgmr.msra.gmra.mxu3 %vm220_vm1, %v1187_v13 }
  0xae   :  { %309 = vrot.lane.b32.xlu0 %v1194_v19, %s1128_s2 }
  0xb5   :  { %912 = vmatmul.msk.f32.gmra.mxu3 %vm220_vm1, %v1190_v15 }
 0x108   :  { %v306_v26 = vpop.permute.xlu1 %305 }
 0x110   :  { %v308_v27 = vpop.permute.xlu1 %307 }
 0x118   :  { %v312_v24 = vpop.permute.xlu0 %311 }
 0x119   :  { %913 = vmatpush.xpose.msk.msrb.mxu0 %vm220_vm1, %v312_v24 }
 0x120   :  { %v310_v25 = vpop.permute.xlu0 %309 }
 0x121   :  { %914 = vmatpush.xpose.msk.msrb.mxu0 %vm220_vm1, %v310_v25 }
 0x124   :  { %915 = vmatmul.msk.f32.vlgmr.msrb.gmra.mxu0 %vm220_vm1, %v306_v26 }
 0x12c   :  { %916 = vmatmul.msk.f32.gmra.mxu0 %vm220_vm1, %v308_v27 }
 0x130   :  { %v250_v47 = vpop.f32.mrf.mxu3 }
 0x131   :  { %v1231_v48 = vadd.f32 %v250_v47, %v1211_v36 }
 0x133   :  { %v257_v49 = vsel %vm256_vm3, %v1231_v48, -inf }
 0x138   :  { %v253_v2 = vpop.f32.mrf.mxu3 }
 0x139   :  { %v1247_v3 = vadd.f32 %v253_v2, %v1215_v42 }
 0x13b   :  { %v260_v6 = vsel %vm256_vm3, %v1247_v3, -inf }
 0x1a1   :  { %v338_v37 = vpop.f32.mrf.mxu0 }
 0x1a2   :  { %v339_v39 = vadd.f32 %v338_v37, %v1211_v36 }
 0x1a4   :  { %v344_v41 = vsel %vm256_vm3, %v339_v39, -inf }
 0x1a5   :  { %345 = vmax.xlane.f32.xlu2 %v344_v41 }
 0x1a9   :  { %v341_v43 = vpop.f32.mrf.mxu0 }
 0x1aa   :  { %v342_v44 = vadd.f32 %v341_v43, %v1215_v42 }
 0x1ac   :  { %v347_v45 = vsel %vm256_vm3, %v342_v44, -inf }
 0x1ad   :  { %348 = vmax.xlane.f32.xlu2 %v347_v45 }
 0x1c5   :  { %956 = vrot.lane.b32.xlu2 %v1219_v46, %s1130_s27 }
 0x1cd   :  { %464 = vrot.lane.b32.xlu2 %v195_v18, %s1131_s28 }
 0x1d5   :  { %588 = vrot.lane.b32.xlu2 %v195_v18, %s1132_s29 }
 0x1dd   :  { %462 = vrot.lane.b32.xlu2 %v1194_v19, %s1131_s28 }
 0x1e5   :  { %582 = vrot.lane.b32.xlu2 %v1187_v13, %s1132_s29 }
 0x1ed   :  { %460 = vrot.lane.b32.xlu2 %v1190_v15, %s1131_s28 }
 0x216   :  { %258 = vmax.xlane.f32.xlu2 %v257_v49 }
 0x218   :  { %v346_v50 = vpop.xlane.xlu2 %345 }
 0x219   :  { %v350_v51 = vsub.f32 %v339_v39, %v346_v50 }
 0x21b   :  { %v352_v52 = vmul.f32 1.442695, %v350_v51 }
 0x21d   :  { %979 = vpow2.f32 %v352_v52 }
 0x220   :  { %v349_v53 = vpop.xlane.xlu2 %348 }
 0x221   :  { %v351_v54 = vsub.f32 %v342_v44, %v349_v53 }
 0x223   :  { %v980_v55 = vpop.eup %979  ;;  %v354_v56 = vmul.f32 1.442695, %v351_v54 }
 0x224   :  { %v356_v57 = vsel %vm256_vm3, %v980_v55, 0.0 }
 0x225   :  { %981 = vpow2.f32 %v354_v56  ;;  %357 = vadd.xlane.f32.xlu0 %v356_v57 }
 0x228   :  { %v957_v58 = vpop.permute.xlu2 %956 }
 0x229   :  { %v959_v59 = vunpack.i.h.bf16 %v957_v58  ;;  %v958_v60 = vunpack.i.l.bf16 %v957_v58 }
 0x22b   :  { %v982_v61 = vpop.eup %981  ;;  %420 = vmatpush.msra.mxu1 %v958_v60 }
 0x22c   :  { %v359_v62 = vsel %vm256_vm3, %v982_v61, 0.0 }
 0x22d   :  { %360 = vadd.xlane.f32.xlu1 %v359_v62  ;;  %421 = vmatpush.msra.mxu1 %v959_v59 }
 0x230   :  { %v465_v63 = vpop.permute.xlu2 %464 }
 0x231   :  { %921 = vmatpush.xpose.msk.msrb.mxu3 %vm220_vm1, %v465_v63 }
 0x238   :  { %v589_v0 = vpop.permute.xlu2 %588 }
 0x239   :  { %586 = vrot.lane.b32.xlu0 %v1194_v19, %s1132_s29  ;;  %927 = vmatpush.xpose.msk.msrb.mxu1 %vm220_vm1, %v589_v0 }
 0x240   :  { %v463_v1 = vpop.permute.xlu2 %462 }
 0x241   :  { %584 = vrot.lane.b32.xlu0 %v1190_v15, %s1132_s29  ;;  %922 = vmatpush.xpose.msk.msrb.mxu3 %vm220_vm1, %v463_v1 }
 0x246   :  { %458 = vrot.lane.b32.xlu1 %v1187_v13, %s1131_s28 }
 0x248   :  { %v583_v32 = vpop.permute.xlu2 %582 }
 0x250   :  { %v461_v34 = vpop.permute.xlu2 %460 }
 0x270   :  { %261 = vmax.xlane.f32.xlu1 %v260_v6 }
 0x289   :  { %v259_v39 = vpop.xlane.xlu2 %258 }
 0x28a   :  { %v263_v40 = vsub.f32 %v1231_v48, %v259_v39 }
 0x28c   :  { %v265_v44 = vmul.f32 1.442695, %v263_v40 }
 0x298   :  { %v358_v7 = vpop.xlane.xlu0 %357 }
 0x299   :  { %983 = vrcp.f32 %v358_v7  ;;  %v373_v12 = vand.u32 2147483648, %v358_v7  ;;  %v371_v15 = vand.u32 2147483647, %v358_v7  ;;  %vm367_vm6 = vweird.f32 %v358_v7 }
 0x29b   :  { %v374_v17 = vor.u32 1.1754944e-38, %v373_v12  ;;  %vm372_vm8 = vcmp.eq.f32.partialorder %v371_v15, 8.507059e+37 }
 0x29f   :  { %v984_v8 = vpop.eup %983 }
 0x2a0   :  { %v363_v9 = vmul.f32 %v984_v8, %v358_v7  ;;  %v361_v10 = vpop.xlane.xlu1 %360  ;;  %vm368_vm5 = vweird.f32 %v984_v8 }
 0x2a1   :  { %985 = vrcp.f32 %v361_v10  ;;  %vm369_vm7 = vmor %vm367_vm6, %vm368_vm5  ;;  %v387_v23 = vand.u32 2147483648, %v361_v10  ;;  %v385_v26 = vand.u32 2147483647, %v361_v10  ;;  %vm381_vm10 = vweird.f32 %v361_v10 }
 0x2a2   :  { %v364_v11 = vsub.f32 1.0, %v363_v9  ;;  %987 = vpow2.f32 %v265_v44 }
 0x2a3   :  { %v388_v28 = vor.u32 1.1754944e-38, %v387_v23  ;;  %vm386_vm12 = vcmp.eq.f32.partialorder %v385_v26, 8.507059e+37 }
 0x2a4   :  { %v365_v14 = vmul.f32 %v984_v8, %v364_v11 }
 0x2a6   :  { %v366_v13 = vadd.f32 %v984_v8, %v365_v14 }
 0x2a7   :  { %v986_v16 = vpop.eup %985 }
 0x2a8   :  { %v370_v18 = vsel %vm369_vm7, %v984_v8, %v366_v13  ;;  %v377_v19 = vmul.f32 %v986_v16, %v361_v10  ;;  %vm382_vm9 = vweird.f32 %v986_v16 }
 0x2a9   :  { %v375_v20 = vsel %vm372_vm8, %v374_v17, %v370_v18  ;;  %vm383_vm11 = vmor %vm381_vm10, %vm382_vm9 }
 0x2aa   :  { %v378_v21 = vsub.f32 1.0, %v377_v19  ;;  %v390_v22 = vmul.f32 %v980_v55, %v375_v20  ;;  %v1269_v55 = vpop.eup %987 }
 0x2ab   :  { %v587_v24 = vpop.permute.xlu0 %586  ;;  %v269_v59 = vsel %vm256_vm3, %v1269_v55, 0.0 }
 0x2ac   :  { %v379_v25 = vmul.f32 %v986_v16, %v378_v21  ;;  %917 = vmatmul.msk.f32.vlgmr.msra.gmra.mxu1 %vm256_vm3, %v390_v22 }
 0x2ad   :  { %928 = vmatpush.xpose.msk.msrb.mxu1 %vm220_vm1, %v587_v24 }
 0x2ae   :  { %v380_v27 = vadd.f32 %v986_v16, %v379_v25 }
 0x2b0   :  { %v384_v29 = vsel %vm383_vm11, %v986_v16, %v380_v27 }
 0x2b1   :  { %v389_v30 = vsel %vm386_vm12, %v388_v28, %v384_v29 }
 0x2b2   :  { %v391_v31 = vmul.f32 %v982_v61, %v389_v30 }
 0x2b3   :  { %v585_v35 = vpop.permute.xlu0 %584 }
 0x2b4   :  { %918 = vmatmul.msk.f32.gmra.mxu1 %vm256_vm3, %v391_v31 }
 0x2b8   :  { %v459_v33 = vpop.permute.xlu1 %458 }
 0x2b9   :  { %923 = vmatmul.msk.f32.vlgmr.msrb.gmra.mxu3 %vm220_vm1, %v459_v33 }
 0x2bc   :  { %929 = vmatmul.msk.f32.vlgmr.msrb.gmra.mxu1 %vm220_vm1, %v583_v32 }
 0x2c1   :  { %924 = vmatmul.msk.f32.gmra.mxu3 %vm220_vm1, %v461_v34 }
 0x2c4   :  { %930 = vmatmul.msk.f32.gmra.mxu1 %vm220_vm1, %v585_v35 }
 0x2e3   :  { %v262_v41 = vpop.xlane.xlu1 %261 }
 0x2e4   :  { %v264_v47 = vsub.f32 %v1247_v3, %v262_v41 }
 0x2e6   :  { %v267_v52 = vmul.f32 1.442695, %v264_v47 }
 0x2e8   :  { %989 = vpow2.f32 %v267_v52 }
 0x2ee   :  { %v1276_v60 = vpop.eup %989 }
 0x2ef   :  { %v272_v61 = vsel %vm256_vm3, %v1276_v60, 0.0 }
 0x329   :  { %v1258_v37 = vpop.f32.mrf.mxu1 }
 0x331   :  { %v1260_v38 = vpop.f32.mrf.mxu1 }
 0x339   :  { %v615_v43 = vpop.f32.mrf.mxu1 }
 0x33a   :  { %v616_v45 = vadd.f32 %v615_v43, %v1211_v36 }
 0x33c   :  { %v491_v49 = vpop.f32.mrf.mxu3  ;;  %v621_v50 = vsel %vm256_vm3, %v616_v45, -inf }
 0x33d   :  { %v492_v51 = vadd.f32 %v491_v49, %v1211_v36  ;;  %622 = vmax.xlane.f32.xlu0 %v621_v50 }
 0x33f   :  { %v497_v53 = vsel %vm256_vm3, %v492_v51, -inf }
 0x340   :  { %498 = vmax.xlane.f32.xlu2 %v497_v53 }
 0x341   :  { %v618_v54 = vpop.f32.mrf.mxu1 }
 0x342   :  { %v619_v48 = vadd.f32 %v618_v54, %v1215_v42 }
 0x344   :  { %v494_v56 = vpop.f32.mrf.mxu3  ;;  %v624_v57 = vsel %vm256_vm3, %v619_v48, -inf }
 0x345   :  { %v495_v58 = vadd.f32 %v494_v56, %v1215_v42  ;;  %625 = vmax.xlane.f32.xlu1 %v624_v57 }
 0x347   :  { %v500_v36 = vsel %vm256_vm3, %v495_v58, -inf }
 0x348   :  { %501 = vmax.xlane.f32.xlu0 %v500_v36  ;;  %270 = vadd.xlane.f32.xlu2 %v269_v59 }
 0x34d   :  { %273 = vadd.xlane.f32.xlu1 %v272_v61 }
 0x3b0   :  { %v623_v62 = vpop.xlane.xlu0 %622 }
 0x3b1   :  { %v627_v63 = vsub.f32 %v616_v45, %v623_v62 }
 0x3b3   :  { %v629_v0 = vmul.f32 1.442695, %v627_v63  ;;  %v499_v1 = vpop.xlane.xlu2 %498 }
 0x3b4   :  { %v503_v2 = vsub.f32 %v492_v51, %v499_v1 }
 0x3b5   :  { %991 = vpow2.f32 %v629_v0 }
 0x3b6   :  { %v505_v42 = vmul.f32 1.442695, %v503_v2 }
 0x3b8   :  { %993 = vpow2.f32 %v505_v42  ;;  %v626_v3 = vpop.xlane.xlu1 %625 }
 0x3b9   :  { %v628_v6 = vsub.f32 %v619_v48, %v626_v3 }
 0x3bb   :  { %v1280_v7 = vpop.eup %991  ;;  %v631_v8 = vmul.f32 1.442695, %v628_v6  ;;  %v502_v9 = vpop.xlane.xlu0 %501 }
 0x3bc   :  { %v271_v10 = vpop.xlane.xlu2 %270  ;;  %v504_v11 = vsub.f32 %v495_v58, %v502_v9  ;;  %v633_v12 = vsel %vm256_vm3, %v1280_v7, 0.0 }
 0x3bd   :  { %995 = vrcp.f32 %v271_v10  ;;  %634 = vadd.xlane.f32.xlu0 %v633_v12  ;;  %v286_v23 = vand.u32 2147483648, %v271_v10  ;;  %v284_v26 = vand.u32 2147483647, %v271_v10  ;;  %vm280_vm14 = vweird.f32 %v271_v10 }
 0x3be   :  { %997 = vpow2.f32 %v631_v8  ;;  %v1284_v14 = vpop.eup %993  ;;  %v507_v15 = vmul.f32 1.442695, %v504_v11 }
 0x3bf   :  { %v509_v13 = vsel %vm256_vm3, %v1284_v14, 0.0  ;;  %v287_v30 = vor.u32 1.1754944e-38, %v286_v23  ;;  %vm285_vm1 = vcmp.eq.f32.partialorder %v284_v26, 8.507059e+37 }
 0x3c0   :  { %999 = vpow2.f32 %v507_v15  ;;  %v274_v16 = vpop.xlane.xlu1 %273  ;;  %510 = vadd.xlane.f32.xlu2 %v509_v13 }
 0x3c1   :  { %1001 = vrcp.f32 %v274_v16  ;;  %v300_v34 = vand.u32 2147483648, %v274_v16  ;;  %v298_v40 = vand.u32 2147483647, %v274_v16  ;;  %vm294_vm4 = vweird.f32 %v274_v16 }
 0x3c3   :  { %v996_v17 = vpop.eup %995  ;;  %v301_v43 = vor.u32 1.1754944e-38, %v300_v34  ;;  %vm299_vm6 = vcmp.eq.f32.partialorder %v298_v40, 8.507059e+37 }
 0x3c4   :  { %v1288_v18 = vpop.eup %997  ;;  %v276_v19 = vmul.f32 %v996_v17, %v271_v10  ;;  %vm281_vm13 = vweird.f32 %v996_v17 }
 0x3c5   :  { %v636_v20 = vsel %vm256_vm3, %v1288_v18, 0.0  ;;  %vm282_vm15 = vmor %vm280_vm14, %vm281_vm13 }
 0x3c6   :  { %v277_v21 = vsub.f32 1.0, %v276_v19  ;;  %637 = vadd.xlane.f32.xlu1 %v636_v20  ;;  %v1292_v22 = vpop.eup %999 }
 0x3c7   :  { %v1002_v24 = vpop.eup %1001  ;;  %v512_v27 = vsel %vm256_vm3, %v1292_v22, 0.0 }
 0x3c8   :  { %v278_v25 = vmul.f32 %v996_v17, %v277_v21  ;;  %v290_v28 = vmul.f32 %v1002_v24, %v274_v16  ;;  %513 = vadd.xlane.f32.xlu0 %v512_v27  ;;  %vm295_vm2 = vweird.f32 %v1002_v24 }
 0x3c9   :  { %vm296_vm5 = vmor %vm294_vm4, %vm295_vm2 }
 0x3ca   :  { %v279_v29 = vadd.f32 %v996_v17, %v278_v25  ;;  %v291_v31 = vsub.f32 1.0, %v290_v28 }
 0x3cc   :  { %v283_v32 = vsel %vm282_vm15, %v996_v17, %v279_v29  ;;  %v292_v33 = vmul.f32 %v1002_v24, %v291_v31 }
 0x3cd   :  { %v288_v35 = vsel %vm285_vm1, %v287_v30, %v283_v32 }
 0x3ce   :  { %v303_v39 = vmul.f32 %v1269_v55, %v288_v35  ;;  %v293_v41 = vadd.f32 %v1002_v24, %v292_v33 }
 0x3d0   :  { %919 = vmatmul.msk.f32.vlgmr.msrb.gmra.mxu2 %vm256_vm3, %v303_v39  ;;  %v297_v44 = vsel %vm296_vm5, %v1002_v24, %v293_v41 }
 0x3d1   :  { %v302_v45 = vsel %vm299_vm6, %v301_v43, %v297_v44 }
 0x3d2   :  { %v304_v47 = vmul.f32 %v1276_v60, %v302_v45 }
 0x3d8   :  { %920 = vmatmul.msk.f32.gmra.mxu2 %vm256_vm3, %v304_v47  ;;  %961 = vrot.lane.b32.xlu2 %v1219_v46, %s1133_s30 }
 0x3df   :  { %966 = vrot.lane.b32.xlu1 %v1219_v46, %s1134_s4 }
 0x430   :  { %v635_v49 = vpop.xlane.xlu0 %634 }
 0x431   :  { %1003 = vrcp.f32 %v635_v49  ;;  %v648_v57 = vand.u32 2147483647, %v635_v49  ;;  %v650_v58 = vand.u32 2147483648, %v635_v49  ;;  %vm644_vm8 = vweird.f32 %v635_v49 }
 0x433   :  { %v511_v50 = vpop.xlane.xlu2 %510  ;;  %v651_v63 = vor.u32 1.1754944e-38, %v650_v58  ;;  %vm649_vm10 = vcmp.eq.f32.partialorder %v648_v57, 8.507059e+37 }
 0x434   :  { %1005 = vrcp.f32 %v511_v50  ;;  %v526_v23 = vand.u32 2147483648, %v511_v50  ;;  %vm520_vm1 = vweird.f32 %v511_v50  ;;  %v524_v24 = vand.u32 2147483647, %v511_v50 }
 0x436   :  { %v527_v27 = vor.u32 1.1754944e-38, %v526_v23  ;;  %vm525_vm4 = vcmp.eq.f32.partialorder %v524_v24, 8.507059e+37  ;;  %v129_v24 = vld [vmem:[#allocation5 + $0xa0] sm:$0xff] }
 0x437   :  { %v1004_v51 = vpop.eup %1003 }
 0x438   :  { %v640_v53 = vmul.f32 %v1004_v51, %v635_v49  ;;  %vm645_vm7 = vweird.f32 %v1004_v51 }
 0x439   :  { %v638_v52 = vpop.xlane.xlu1 %637  ;;  %vm646_vm9 = vmor %vm644_vm8, %vm645_vm7 }
 0x43a   :  { %1007 = vrcp.f32 %v638_v52  ;;  %v1006_v54 = vpop.eup %1005  ;;  %v641_v48 = vsub.f32 1.0, %v640_v53  ;;  %v664_v8 = vand.u32 2147483648, %v638_v52  ;;  %v662_v11 = vand.u32 2147483647, %v638_v52 }
 0x43b   :  { %v1302_v55 = vpop.xlane.xlu0 %513  ;;  %v962_v56 = vpop.permute.xlu2 %961  ;;  %v516_v59 = vmul.f32 %v1006_v54, %v511_v50  ;;  %vm658_vm12 = vweird.f32 %v638_v52  ;;  %vm521_vm15 = vweird.f32 %v1006_v54  ;;  %v972_v50 = vld [vmem:[#allocation7 + $0x2] ss:$0 sm:$0xff] }
 0x43c   :  { %v642_v36 = vmul.f32 %v1004_v51, %v641_v48  ;;  %1009 = vrcp.f32 %v1302_v55  ;;  %v963_v46 = vunpack.i.l.bf16 %v962_v56  ;;  %v964_v62 = vunpack.i.h.bf16 %v962_v56  ;;  %vm522_vm2 = vmor %vm520_vm1, %vm521_vm15 }
 0x43d   :  { %v517_v42 = vsub.f32 1.0, %v516_v59  ;;  %v665_v16 = vor.u32 1.1754944e-38, %v664_v8  ;;  %vm663_vm14 = vcmp.eq.f32.partialorder %v662_v11, 8.507059e+37  ;;  %v540_v32 = vand.u32 2147483648, %v1302_v55  ;;  %v123_v11 = vld [vmem:[#allocation5 + $0x70] sm:$0xff] }
 0x43e   :  { %v643_v61 = vadd.f32 %v1004_v51, %v642_v36  ;;  %695 = vmatpush.msra.mxu2 %v963_v46  ;;  %vm534_vm6 = vweird.f32 %v1302_v55  ;;  %v538_v34 = vand.u32 2147483647, %v1302_v55  ;;  %vm799_vm15 = vcmask 523264  }
 0x43f   :  { %v518_v12 = vmul.f32 %v1006_v54, %v517_v42  ;;  %v541_v39 = vor.u32 1.1754944e-38, %v540_v32 }
 0x440   :  { %v1008_v60 = vpop.eup %1007  ;;  %v647_v1 = vsel %vm646_vm9, %v1004_v51, %v643_v61  ;;  %696 = vmatpush.msra.mxu2 %v964_v62  ;;  %vm539_vm8 = vcmp.eq.f32.partialorder %v538_v34, 8.507059e+37  ;;  %v973_v34 = vld [vmem:[#allocation7 + $0x5] ss:$0 sm:$0xff] }
 0x441   :  { %v654_v0 = vmul.f32 %v1008_v60, %v638_v52  ;;  %v652_v2 = vsel %vm649_vm10, %v651_v63, %v647_v1  ;;  %vm659_vm11 = vweird.f32 %v1008_v60  ;;  %v519_v20 = vadd.f32 %v1006_v54, %v518_v12  ;;  %v122_v12 = vld [vmem:[#allocation5 + $0x68] sm:$0xff] }
 0x442   :  { %v1010_v6 = vpop.eup %1009  ;;  %v667_v9 = vmul.f32 %v1280_v7, %v652_v2  ;;  %vm660_vm13 = vmor %vm658_vm12, %vm659_vm11 }
 0x443   :  { %v655_v3 = vsub.f32 1.0, %v654_v0  ;;  %v530_v15 = vmul.f32 %v1010_v6, %v1302_v55  ;;  %v523_v25 = vsel %vm522_vm2, %v1006_v54, %v519_v20  ;;  %vm535_vm5 = vweird.f32 %v1010_v6  ;;  %v131_v20 = vld [vmem:[#allocation5 + $0xb0] sm:$0xff] }
 0x444   :  { %931 = vmatmul.msk.f32.vlgmr.msra.gmra.mxu2 %vm256_vm3, %v667_v9  ;;  %v528_v29 = vsel %vm525_vm4, %v527_v27, %v523_v25  ;;  %vm536_vm7 = vmor %vm534_vm6, %vm535_vm5  ;;  %v128_v27 = vld [vmem:[#allocation5 + $0x98] sm:$0xff] }
 0x445   :  { %v656_v10 = vmul.f32 %v1008_v60, %v655_v3  ;;  %v531_v21 = vsub.f32 1.0, %v530_v15  ;;  %v121_v15 = vld [vmem:[#allocation5 + $0x60] sm:$0xff] }
 0x447   :  { %v657_v13 = vadd.f32 %v1008_v60, %v656_v10  ;;  %v532_v26 = vmul.f32 %v1010_v6, %v531_v21  ;;  %v124_v10 = vld [vmem:[#allocation5 + $0x78] sm:$0xff]  ;;  %v130_v21 = vld [vmem:[#allocation5 + $0xa8] sm:$0xff] }
 0x448   :  { %785 = vmatpush.msra.mxu3 %v124_v10 }
 0x449   :  { %v661_v17 = vsel %vm660_vm13, %v1008_v60, %v657_v13  ;;  %v533_v31 = vadd.f32 %v1010_v6, %v532_v26 }
 0x44a   :  { %v666_v19 = vsel %vm663_vm14, %v665_v16, %v661_v17  ;;  %786 = vmatpush.msra.mxu3 %v123_v11 }
 0x44b   :  { %v668_v7 = vmul.f32 %v1288_v18, %v666_v19  ;;  %v543_v18 = vmul.f32 %v1284_v14, %v528_v29  ;;  %v537_v35 = vsel %vm536_vm7, %v1010_v6, %v533_v31  ;;  %v132_v19 = vld [vmem:[#allocation5 + $0xb8] sm:$0xff] }
 0x44c   :  { %v542_v40 = vsel %vm539_vm8, %v541_v39, %v537_v35  ;;  %787 = vmatpush.msra.mxu3 %v122_v12 }
 0x44d   :  { %932 = vmatmul.msk.f32.gmra.mxu2 %vm256_vm3, %v668_v7  ;;  %v544_v41 = vmul.f32 %v1292_v22, %v542_v40 }
 0x44e   :  { %788 = vmatpush.msra.mxu3 %v121_v15 }
 0x451   :  { %v967_v28 = vpop.permute.xlu1 %966 }
 0x452   :  { %v968_v30 = vunpack.i.l.bf16 %v967_v28  ;;  %v969_v33 = vunpack.i.h.bf16 %v967_v28 }
 0x453   :  { %v452_v43 = vpop.f32.mrf.mxu2 }
 0x454   :  { %571 = vmatpush.msra.mxu0 %v968_v30  ;;  %v453_v45 = vadd.f32 %v452_v43, %v1258_v37  ;;  %v1135_v37 = vmov 32.0  }
 0x455   :  { %1011 = vrcp.f32 %v1135_v37 }
 0x456   :  { %572 = vmatpush.msra.mxu0 %v969_v33 }
 0x457   :  { %925 = vmatmul.msk.f32.vlgmr.msra.gmra.mxu0 %vm256_vm3, %v543_v18 }
 0x458   :  { %814 = vmatpush.msrb.mxu0 %v132_v19 }
 0x45a   :  { %815 = vmatpush.msrb.mxu0 %v131_v20 }
 0x45b   :  { %v455_v44 = vpop.f32.mrf.mxu2  ;;  %v1012_v36 = vpop.eup %1011 }
 0x45c   :  { %v456_v53 = vadd.f32 %v455_v44, %v1260_v38  ;;  %v716_v46 = vmul.f32 32.0, %v1012_v36  ;;  %816 = vmatpush.msrb.mxu0 %v130_v21 }
 0x45e   :  { %v717_v59 = vsub.f32 1.0, %v716_v46  ;;  %817 = vmatpush.msrb.mxu0 %v129_v24  ;;  %v976_v46 = vld [vmem:[#allocation7 + $0x4] ss:$0 sm:$0xff] }
 0x45f   :  { %926 = vmatmul.msk.f32.gmra.mxu0 %vm256_vm3, %v544_v41  ;;  %vm720_vm3 = vweird.f32 %v1012_v36  ;;  %v974_v41 = vld [vmem:[#allocation7 + $0x6] ss:$0 sm:$0xff] }
 0x460   :  { %v718_v60 = vmul.f32 %v1012_v36, %v717_v59  ;;  %818 = vmatpush.msrb.mxu0 %v128_v27 }
 0x462   :  { %v719_v61 = vadd.f32 %v1012_v36, %v718_v60 }
 0x464   :  { %v1321_v38 = vsel %vm720_vm3, %v1012_v36, %v719_v61 }
 0x4c7   :  { %v698_v47 = vpop.f32.mrf.mxu2 }
 0x4d0   :  { %v701_v22 = vpop.f32.mrf.mxu2 }
 0x4d4   :  { %v574_v14 = vpop.f32.mrf.mxu0 }
 0x4d5   :  { %v580_v49 = vadd.f32 %v574_v14, %v453_v45 }
 0x4d7   :  { %v704_v51 = vadd.f32 %v698_v47, %v580_v49 }
 0x4d9   :  { %v707_v52 = vadd.f32 %v972_v50, %v704_v51 }
 0x4db   :  { %v709_v54 = vsel %vm143_vm0, %v707_v52, 0.0 }
 0x4dc   :  { %v577_v48 = vpop.f32.mrf.mxu0  ;;  %710 = vadd.xlane.f32.xlu0 %v709_v54  ;;  %v126_v54 = vld [vmem:[#allocation5 + $0x88] sm:$0xff] }
 0x4dd   :  { %v581_v55 = vadd.f32 %v577_v48, %v456_v53  ;;  %v127_v53 = vld [vmem:[#allocation5 + $0x90] sm:$0xff]  ;;  %v125_v48 = vld [vmem:[#allocation5 + $0x80] sm:$0xff] }
 0x4de   :  { %819 = vmatpush.msrb.mxu0 %v127_v53 }
 0x4df   :  { %v705_v56 = vadd.f32 %v701_v22, %v581_v55  ;;  %v975_v55 = vld [vmem:[#allocation7 + $0x3] ss:$0 sm:$0xff] }
 0x4e0   :  { %820 = vmatpush.msrb.mxu0 %v126_v54 }
 0x4e1   :  { %v708_v57 = vadd.f32 %v972_v50, %v705_v56 }
 0x4e2   :  { %821 = vmatpush.msrb.mxu0 %v125_v48 }
 0x4e3   :  { %v712_v58 = vsel %vm143_vm0, %v708_v57, 0.0 }
 0x4e4   :  { %713 = vadd.xlane.f32.xlu0 %v712_v58 }
 0x54f   :  { %v711_v62 = vpop.xlane.xlu0 %710 }
 0x550   :  { %v722_v63 = vmul.f32 %v1321_v38, %v711_v62 }
 0x552   :  { %v724_v0 = vsub.f32 %v707_v52, %v722_v63 }
 0x554   :  { %v726_v1 = vmul.f32 %v724_v0, %v724_v0 }
 0x556   :  { %v728_v2 = vsel %vm143_vm0, %v726_v1, 0.0 }
 0x557   :  { %729 = vadd.xlane.f32.xlu0 %v728_v2  ;;  %v714_v42 = vpop.xlane.xlu0 %713 }
 0x558   :  { %v723_v3 = vmul.f32 %v1321_v38, %v714_v42 }
 0x55a   :  { %v725_v6 = vsub.f32 %v708_v57, %v723_v3 }
 0x55c   :  { %v727_v8 = vmul.f32 %v725_v6, %v725_v6 }
 0x55e   :  { %v731_v9 = vsel %vm143_vm0, %v727_v8, 0.0 }
 0x55f   :  { %732 = vadd.xlane.f32.xlu2 %v731_v9 }
 0x5ca   :  { %v730_v13 = vpop.xlane.xlu0 %729 }
 0x5cb   :  { %v734_v16 = vmul.f32 %v730_v13, %v1321_v38 }
 0x5cd   :  { %v736_v17 = vadd.f32 1e-05, %v734_v16 }
 0x5cf   :  { %1013 = vrsqrt.f32 %v736_v17  ;;  %vm744_vm10 = vweird.f32 %v736_v17 }
 0x5d2   :  { %v733_v7 = vpop.xlane.xlu2 %732 }
 0x5d3   :  { %v735_v23 = vmul.f32 %v733_v7, %v1321_v38 }
 0x5d5   :  { %v1014_v25 = vpop.eup %1013  ;;  %v737_v26 = vadd.f32 1e-05, %v735_v23 }
 0x5d6   :  { %v739_v28 = vmul.f32 %v1014_v25, %v736_v17  ;;  %vm745_vm9 = vweird.f32 %v1014_v25 }
 0x5d7   :  { %1015 = vrsqrt.f32 %v737_v26  ;;  %vm746_vm11 = vmor %vm744_vm10, %vm745_vm9  ;;  %vm754_vm13 = vweird.f32 %v737_v26 }
 0x5d8   :  { %v740_v29 = vmul.f32 %v1014_v25, %v739_v28 }
 0x5da   :  { %v741_v30 = vmul.f32 0.5, %v740_v29  ;;  %v977_v29 = vld [vmem:[#allocation7 + $0x7] ss:$0 sm:$0xff] }
 0x5dc   :  { %v742_v31 = vsub.f32 1.5, %v741_v30 }
 0x5dd   :  { %v1016_v32 = vpop.eup %1015 }
 0x5de   :  { %v743_v33 = vmul.f32 %v1014_v25, %v742_v31  ;;  %v749_v18 = vmul.f32 %v1016_v32, %v737_v26  ;;  %vm755_vm12 = vweird.f32 %v1016_v32 }
 0x5df   :  { %vm756_vm14 = vmor %vm754_vm13, %vm755_vm12 }
 0x5e0   :  { %v747_v35 = vsel %vm746_vm11, %v1014_v25, %v743_v33  ;;  %v750_v39 = vmul.f32 %v1016_v32, %v749_v18  ;;  %v978_v33 = vld [vmem:[#allocation7 + $0x8] ss:$0 sm:$0xff] }
 0x5e1   :  { %v758_v40 = vmul.f32 %v747_v35, %v724_v0 }
 0x5e2   :  { %v751_v43 = vmul.f32 0.5, %v750_v39 }
 0x5e3   :  { %v761_v44 = vmul.f32 %v973_v34, %v758_v40 }
 0x5e4   :  { %v752_v45 = vsub.f32 1.5, %v751_v43 }
 0x5e5   :  { %v764_v47 = vadd.f32 %v974_v41, %v761_v44 }
 0x5e6   :  { %v753_v14 = vmul.f32 %v1016_v32, %v752_v45 }
 0x5e7   :  { %933 = vmatmul.msk.f32.vlgmr.msra.gmra.mxu3 %vm143_vm0, %v764_v47 }
 0x5e8   :  { %v757_v49 = vsel %vm756_vm14, %v1016_v32, %v753_v14 }
 0x5e9   :  { %v759_v50 = vmul.f32 %v757_v49, %v725_v6 }
 0x5eb   :  { %v762_v51 = vmul.f32 %v973_v34, %v759_v50 }
 0x5ed   :  { %v765_v52 = vadd.f32 %v974_v41, %v762_v51 }
 0x5ef   :  { %934 = vmatmul.msk.f32.gmra.mxu3 %vm143_vm0, %v765_v52 }
 0x66a   :  { %v790_v22 = vpop.f32.mrf.mxu3 }
 0x66b   :  { %v791_v56 = vadd.f32 %v975_v55, %v790_v22 }
 0x66d   :  { %v796_v57 = vmax.f32 %v791_v56, 0.0 }
 0x66f   :  { %935 = vmatmul.msk.f32.vlgmr.msrb.gmra.mxu0 %vm799_vm15, %v796_v57 }
 0x672   :  { %v793_v58 = vpop.f32.mrf.mxu3 }
 0x673   :  { %v794_v37 = vadd.f32 %v975_v55, %v793_v58 }
 0x675   :  { %v797_v36 = vmax.f32 %v794_v37, 0.0 }
 0x677   :  { %936 = vmatmul.msk.f32.gmra.mxu0 %vm799_vm15, %v797_v36 }
 0x6ec   :  { %v823_v59 = vpop.f32.mrf.mxu0 }
 0x6ed   :  { %v824_v60 = vadd.f32 %v976_v46, %v823_v59 }
 0x6ef   :  { %v829_v61 = vadd.f32 %v824_v60, %v1175_v4 }
 0x6f1   :  { %v831_v62 = vsel %vm143_vm0, %v829_v61, 0.0 }
 0x6f2   :  { %832 = vadd.xlane.f32.xlu1 %v831_v62 }
 0x6f4   :  { %v826_v63 = vpop.f32.mrf.mxu0 }
 0x6f5   :  { %v827_v0 = vadd.f32 %v976_v46, %v826_v63 }
 0x6f7   :  { %v830_v1 = vadd.f32 %v827_v0, %v1177_v5 }
 0x6f9   :  { %v834_v2 = vsel %vm143_vm0, %v830_v1, 0.0 }
 0x6fa   :  { %835 = vadd.xlane.f32.xlu0 %v834_v2 }
 0x765   :  { %v833_v42 = vpop.xlane.xlu1 %832 }
 0x766   :  { %v837_v3 = vmul.f32 %v833_v42, %v1321_v38 }
 0x768   :  { %v839_v6 = vsub.f32 %v829_v61, %v837_v3 }
 0x76a   :  { %v841_v8 = vmul.f32 %v839_v6, %v839_v6 }
 0x76c   :  { %v843_v9 = vsel %vm143_vm0, %v841_v8, 0.0 }
 0x76d   :  { %v836_v10 = vpop.xlane.xlu0 %835  ;;  %844 = vadd.xlane.f32.xlu0 %v843_v9 }
 0x76e   :  { %v838_v4 = vmul.f32 %v836_v10, %v1321_v38 }
 0x770   :  { %v840_v11 = vsub.f32 %v830_v1, %v838_v4 }
 0x772   :  { %v842_v12 = vmul.f32 %v840_v11, %v840_v11 }
 0x774   :  { %v846_v15 = vsel %vm143_vm0, %v842_v12, 0.0 }
 0x775   :  { %847 = vadd.xlane.f32.xlu0 %v846_v15 }
 0x7e0   :  { %v845_v5 = vpop.xlane.xlu0 %844 }
 0x7e1   :  { %v849_v13 = vmul.f32 %v845_v5, %v1321_v38 }
 0x7e3   :  { %v851_v16 = vadd.f32 1e-05, %v849_v13 }
 0x7e5   :  { %1017 = vrsqrt.f32 %v851_v16  ;;  %vm859_vm2 = vweird.f32 %v851_v16 }
 0x7e8   :  { %v848_v17 = vpop.xlane.xlu0 %847 }
 0x7e9   :  { %v850_v19 = vmul.f32 %v848_v17, %v1321_v38 }
 0x7eb   :  { %v1018_v20 = vpop.eup %1017  ;;  %v852_v21 = vadd.f32 1e-05, %v850_v19 }
 0x7ec   :  { %v854_v7 = vmul.f32 %v1018_v20, %v851_v16  ;;  %vm860_vm1 = vweird.f32 %v1018_v20 }
 0x7ed   :  { %1019 = vrsqrt.f32 %v852_v21  ;;  %vm861_vm4 = vmor %vm859_vm2, %vm860_vm1  ;;  %vm869_vm6 = vweird.f32 %v852_v21 }
 0x7ee   :  { %v855_v23 = vmul.f32 %v1018_v20, %v854_v7 }
 0x7f0   :  { %v856_v24 = vmul.f32 0.5, %v855_v23 }
 0x7f2   :  { %v857_v25 = vsub.f32 1.5, %v856_v24 }
 0x7f3   :  { %v1020_v26 = vpop.eup %1019 }
 0x7f4   :  { %v858_v27 = vmul.f32 %v1018_v20, %v857_v25  ;;  %v864_v28 = vmul.f32 %v1020_v26, %v852_v21  ;;  %vm870_vm5 = vweird.f32 %v1020_v26 }
 0x7f5   :  { %vm871_vm7 = vmor %vm869_vm6, %vm870_vm5 }
 0x7f6   :  { %v862_v30 = vsel %vm861_vm4, %v1018_v20, %v858_v27  ;;  %v865_v31 = vmul.f32 %v1020_v26, %v864_v28 }
 0x7f7   :  { %v873_v32 = vmul.f32 %v862_v30, %v839_v6 }
 0x7f8   :  { %v866_v18 = vmul.f32 0.5, %v865_v31 }
 0x7f9   :  { %v876_v38 = vmul.f32 %v977_v29, %v873_v32 }
 0x7fa   :  { %v867_v34 = vsub.f32 1.5, %v866_v18 }
 0x7fb   :  { %v879_v35 = vadd.f32 %v978_v33, %v876_v38 }
 0x7fc   :  { %v868_v39 = vmul.f32 %v1020_v26, %v867_v34 }
 0x7fd   :  { %881 = vst.msk [vmem:[#allocation8] sm:$0xff] %vm143_vm0, %v879_v35 }
 0x7fe   :  { %v872_v40 = vsel %vm871_vm7, %v1020_v26, %v868_v39 }
 0x7ff   :  { %v874_v41 = vmul.f32 %v872_v40, %v840_v11 }
 0x801   :  { %v877_v43 = vmul.f32 %v977_v29, %v874_v41 }
 0x803   :  { %v880_v44 = vadd.f32 %v978_v33, %v877_v43 }
 0x805   :  { %882 = vst.msk [vmem:[#allocation8 + $0x8] sm:$0xff] %vm143_vm0, %v880_v44 }
 0x806   :  { %895 = dma.vmem_to_hbm [thread:$0]  %s888_s6, 256, %s890_s9, [#allocation4], %s1124_s20, %s1124_s20, %s1125_s21  }
 0x807   :  { %1121 = dma.done.wait [#allocation4], 256  }
 0x808   :  { %1122 = vsyncadd [#allocation4], 4294967040 }
 0x809   :  { %900 = vsyncpa [#allocation3], 1 }
 0x80a   :  { %901 = vsyncpa [#allocation6], 1 }
 0x80b   :  { %902 = vsyncpa [#allocation4], 1 }

</bundles_post_ra>
